<compile_context>
chip_gen: v6e
topology: v6e:2x2x1
jax: 0.10.0
libtpu: 0.0.40
codegen_flags: <defaults>
</compile_context>

<pallas_src>
import jax
import jax.numpy as jnp
from jax.experimental import pallas as pl
from jax.experimental.pallas import tpu as pltpu


def _rbf_gram_kernel(xs_ref, xs2_ref, rterm_ref, cterm_ref, k_ref):
    """Compute one (tm, tn) tile of the Gram matrix.

    xs_ref    : VMEM (tm, D)  row block of X / (sqrt(2)*ls)
    xs2_ref   : VMEM (tn, D)  column block of 2 * X / (sqrt(2)*ls)
    rterm_ref : VMEM (tm, 1)  log(var) - ||xs_i||^2
    cterm_ref : VMEM (1, tn)  -||xs_j||^2
    k_ref     : VMEM (tm, tn) output tile

    K[i,j] = exp( rterm_i + cterm_j + xs_i . xs2_j )
           = var * exp(-||x_i - x_j||^2 / (2 ls^2))
    """
    cross2 = jax.lax.dot_general(                       # (tm, tn) on the MXU
        xs_ref[...], xs2_ref[...],
        (((1,), (1,)), ((), ())),
        preferred_element_type=jnp.float32)
    expo = cross2 + rterm_ref[...] + cterm_ref[...]     # two broadcast adds (VPU)
    k_ref[...] = jnp.exp(expo).astype(k_ref.dtype)      # exp on the EUP


def rbf_gram(X, hyper, *, tm=256, tn=512, out_dtype=jnp.float32):
    """Pallas-backed RBF Gram matrix: K[i,j] = var*exp(-||xi-xj||^2 / (2 ls^2)).

    hyper = [lengthscale, variance] (variance must be > 0).
    On v6e/v7x, pass out_dtype=jnp.bfloat16 to halve HBM writeback if the
    consumer tolerates ~1e-2 relative error.
    """
    N, D = X.shape
    tm = min(tm, N)
    tn = min(tn, N)
    assert N % tm == 0 and N % tn == 0, "N must be divisible by tile sizes"
    assert tm % 8 == 0, "row tile must be a multiple of 8 (sublanes)"
    assert tn % 128 == 0 or tn == N, "col tile must be a multiple of 128 lanes"

    ls = hyper[0].astype(jnp.float32)
    var = hyper[1].astype(jnp.float32)

    # Hoisted, one-time O(N*D) preprocessing (replaces O(N^2) in-kernel muls
    # and the per-step column-norm reduction + transpose).
    inv_s2ls = 1.0 / (jnp.sqrt(jnp.float32(2.0)) * ls)
    Xs = X.astype(jnp.float32) * inv_s2ls               # (N, D)
    Xs2 = Xs * 2.0                                      # (N, D)
    sq = jnp.sum(Xs * Xs, axis=-1)                      # (N,)
    row_term = (jnp.log(var) - sq)[:, None]             # (N, 1)
    col_term = (-sq)[None, :]                           # (1, N)

    grid = (N // tm, N // tn)
    return pl.pallas_call(
        _rbf_gram_kernel,
        out_shape=jax.ShapeDtypeStruct((N, N), out_dtype),
        grid_spec=pltpu.PrefetchScalarGridSpec(
            num_scalar_prefetch=0,
            grid=grid,
            in_specs=[
                pl.BlockSpec((tm, D), lambda i, j: (i, 0)),   # row block of Xs
                pl.BlockSpec((tn, D), lambda i, j: (j, 0)),   # col block of 2*Xs
                pl.BlockSpec((tm, 1), lambda i, j: (i, 0)),   # row term
                pl.BlockSpec((1, tn), lambda i, j: (0, j)),   # col term
            ],
            out_specs=pl.BlockSpec((tm, tn), lambda i, j: (i, j)),
        ),
        compiler_params=pltpu.CompilerParams(
            dimension_semantics=("parallel", "parallel")),
    )(Xs, Xs2, row_term, col_term)


class Gram:
    """JAX analogue of the PyTorch Gram module: holds `hyper`, forwards to kernel."""

    def __init__(self, hyper):
        self.hyper = hyper  # "learnable" parameter (deterministically initialized)

    def __call__(self, X, kernel):
        return kernel(X, self.hyper)


def _reference_rbf(X, hyper):
    ls, var = hyper[0], hyper[1]
    d2 = jnp.sum((X[:, None, :] - X[None, :, :]) ** 2, axis=-1)
    return var * jnp.exp(-0.5 * d2 / (ls * ls))


if __name__ == "__main__":
    key = jax.random.PRNGKey(0)
    N, D = 256, 32
    X = jax.random.normal(key, (N, D), dtype=jnp.float32)

    # Deterministic parameter init (module __init__ stores the given hyper tensor).
    hyper = jnp.array([1.5, 0.8], dtype=jnp.float32)  # [lengthscale, variance]

    gram = Gram(hyper)
    K = gram(X, rbf_gram)
    K = jax.block_until_ready(K)

    K_ref = _reference_rbf(X, hyper)
    assert K.shape == (N, N)
    assert jnp.allclose(K, K_ref, atol=1e-4, rtol=1e-4), "mismatch vs reference"

    print("KERNEL_OK")
</pallas_src>

<mosaic_0001>
module attributes {stable_mosaic.version = 11 : i64} {
  func.func @_rbf_gram_kernel(%arg0: i32, %arg1: i32, %arg2: memref<256x32xf32, #tpu.memory_space<vmem>>, %arg3: memref<256x32xf32, #tpu.memory_space<vmem>>, %arg4: memref<256x1xf32, #tpu.memory_space<vmem>>, %arg5: memref<1x256xf32, #tpu.memory_space<vmem>>, %arg6: memref<256x256xf32, #tpu.memory_space<vmem>>) attributes {dimension_semantics = [#tpu.dimension_semantics<parallel>, #tpu.dimension_semantics<parallel>], iteration_bounds = array<i64: 1, 1>, scalar_prefetch = 0 : i64, scratch_operands = 0 : i64, tpu.core_type = #tpu.core_type<tc>, window_params = [{transform_indices = @transform_0, window_bounds = array<i64: 256, 32>}, {transform_indices = @transform_1, window_bounds = array<i64: 256, 32>}, {transform_indices = @transform_2, window_bounds = array<i64: 256, 1>}, {transform_indices = @transform_3, window_bounds = array<i64: 1, 256>}, {transform_indices = @transform_4, window_bounds = array<i64: 256, 256>}]} {
    %c0 = arith.constant 0 : index
    %c0_0 = arith.constant 0 : index
    %0 = vector.load %arg2[%c0, %c0_0] : memref<256x32xf32, #tpu.memory_space<vmem>>, vector<256x32xf32>
    %c0_1 = arith.constant 0 : index
    %c0_2 = arith.constant 0 : index
    %1 = vector.load %arg3[%c0_1, %c0_2] : memref<256x32xf32, #tpu.memory_space<vmem>>, vector<256x32xf32>
    %cst = arith.constant dense<0.000000e+00> : vector<256x256xf32>
    %2 = tpu.matmul %0, %1, %cst {dimension_numbers = #tpu.dot_dimension_numbers<[1], [1], [0], [0], [0, 0, 1, 0], [], []>} : vector<256x32xf32>, vector<256x32xf32>, vector<256x256xf32> -> vector<256x256xf32>
    %c0_3 = arith.constant 0 : index
    %c0_4 = arith.constant 0 : index
    %3 = vector.load %arg4[%c0_3, %c0_4] : memref<256x1xf32, #tpu.memory_space<vmem>>, vector<256x1xf32>
    %4 = vector.broadcast %3 : vector<256x1xf32> to vector<256x256xf32>
    %5 = arith.addf %2, %4 : vector<256x256xf32>
    %c0_5 = arith.constant 0 : index
    %c0_6 = arith.constant 0 : index
    %6 = vector.load %arg5[%c0_5, %c0_6] : memref<1x256xf32, #tpu.memory_space<vmem>>, vector<1x256xf32>
    %7 = vector.broadcast %6 : vector<1x256xf32> to vector<256x256xf32>
    %8 = arith.addf %5, %7 : vector<256x256xf32>
    %9 = math.exp %8 : vector<256x256xf32>
    %c0_7 = arith.constant 0 : index
    %c0_8 = arith.constant 0 : index
    %10 = vector.load %arg6[%c0_7, %c0_8] : memref<256x256xf32, #tpu.memory_space<vmem>>, vector<256x256xf32>
    tpu.vector_store %arg6[%c0_7, %c0_8], %9 {strides = array<i32>} : memref<256x256xf32, #tpu.memory_space<vmem>>, vector<256x256xf32>,
    return
  }
  func.func @transform_0(%arg0: i32, %arg1: i32) -> (i32, i32) {
    %c0_i32 = arith.constant 0 : i32
    %c0_i32_0 = arith.constant 0 : i32
    return %arg0, %c0_i32 : i32, i32
  }
  func.func @transform_1(%arg0: i32, %arg1: i32) -> (i32, i32) {
    %c0_i32 = arith.constant 0 : i32
    %c0_i32_0 = arith.constant 0 : i32
    return %arg1, %c0_i32 : i32, i32
  }
  func.func @transform_2(%arg0: i32, %arg1: i32) -> (i32, i32) {
    %c0_i32 = arith.constant 0 : i32
    %c0_i32_0 = arith.constant 0 : i32
    return %arg0, %c0_i32 : i32, i32
  }
  func.func @transform_3(%arg0: i32, %arg1: i32) -> (i32, i32) {
    %c0_i32 = arith.constant 0 : i32
    %c0_i32_0 = arith.constant 0 : i32
    return %c0_i32, %arg1 : i32, i32
  }
  func.func @transform_4(%arg0: i32, %arg1: i32) -> (i32, i32) {
    %c0_i32 = arith.constant 0 : i32
    return %arg0, %arg1 : i32, i32
  }
}

</mosaic_0001>

<bundles_post_ra>
// kernel: tpu_custom_call.1
= control target key start
LH: loop header
LB: loop body
LE: loop exit
PB: predicated region body
PF: predicated region fallthrough
CT: control target
= control target key end

     0   :  { %vm274_vm0 = vcmask 261120   ;;  %v1356_v5 = vmov 0   ;;  %s1939_s0 = inlined_call_operand.vmem [shape: f32[256,32], index: 0, kind: input, shape index: {}]   ;;  %s1940_s1 = inlined_call_operand.vmem [shape: f32[256,32], index: 1, kind: input, shape index: {}]   ;;  %s1941_s2 = inlined_call_operand.vmem [shape: f32[256,1], index: 2, kind: input, shape index: {}]   ;;  %s1942_s3 = inlined_call_operand.vmem [shape: f32[1,256], index: 3, kind: input, shape index: {}]   ;;  %s1943_s4 = inlined_call_operand.hbm [shape: f32[256,256], index: 4, kind: output, shape index: {}]  }
   0x1   :  { %v81_v0 = vld [vmem:[%s1940_s1 + $0xf8] sm:$0xff]  ;;  %v80_v2 = vld [vmem:[%s1940_s1 + $0xf0] sm:$0xff]  ;;  %v79_v4 = vld [vmem:[%s1940_s1 + $0xe8] sm:$0xff]  ;;  %1205 = vset.pattern.permute.xlu1 %v1356_v5  ;;  %1204 = vset.pattern.permute.xlu0 %v1356_v5 }
   0x2   :  { %v65_v1 = vld [vmem:[%s1940_s1 + $0x78] sm:$0xff]  ;;  %1072 = vmatprep.subr.msk.mxu0 %vm274_vm0, %v81_v0  ;;  %1168 = vmatprep.subr.msk.mxu1 %vm274_vm0, %v81_v0  ;;  %v64_v3 = vld [vmem:[%s1940_s1 + $0x70] sm:$0xff]  ;;  %v63_v6 = vld [vmem:[%s1940_s1 + $0x68] sm:$0xff] }
   0x3   :  { %1073 = vmatpush3.xpose.msk.msra.mxu0 %vm274_vm0, %v65_v1  ;;  %1184 = vmatpush3.xpose.msk.msra.mxu1 %vm274_vm0, %v65_v1  ;;  %v78_v7 = vld [vmem:[%s1940_s1 + $0xe0] sm:$0xff]  ;;  %v77_v11 = vld [vmem:[%s1940_s1 + $0xd8] sm:$0xff]  ;;  %v84_v12 = vld [vmem:[%s1941_s2 + $0x10] sm:$0xff] }
   0x4   :  { %1074 = vmatprep.subr.msk.mxu0 %vm274_vm0, %v80_v2  ;;  %1169 = vmatprep.subr.msk.mxu1 %vm274_vm0, %v80_v2  ;;  %v1421_v8 = vld [vmem:[%s1939_s0] sm:$0xff]  ;;  %v85_v14 = vld [vmem:[%s1941_s2 + $0x18] sm:$0xff]  ;;  %v76_v16 = vld [vmem:[%s1940_s1 + $0xd0] sm:$0xff] }
   0x5   :  { %v62_v9 = vld [vmem:[%s1940_s1 + $0x60] sm:$0xff]  ;;  %1104 = vmatprep.mubr.msk.f32.mxu0 %vm274_vm0, %v1421_v8  ;;  %126 = vperm.xlu1 %1205, %v84_v12   ;;  %v61_v15 = vld [vmem:[%s1940_s1 + $0x58] sm:$0xff]  ;;  %v83_v17 = vld [vmem:[%s1941_s2 + $0x8] sm:$0xff] }
   0x6   :  { %v1431_v10 = vld [vmem:[%s1939_s0 + $0x80] sm:$0xff]  ;;  %v87_v18 = vld [vmem:[%s1941_s2 + $0x28] sm:$0xff]  ;;  %v60_v19 = vld [vmem:[%s1940_s1 + $0x50] sm:$0xff] }
   0x7   :  { %1075 = vmatpush3.xpose.msk.msra.mxu0 %vm274_vm0, %v64_v3  ;;  %1185 = vmatpush3.xpose.msk.msra.mxu1 %vm274_vm0, %v64_v3  ;;  %v82_v13 = vld [vmem:[%s1941_s2] sm:$0xff]  ;;  %v75_v20 = vld [vmem:[%s1940_s1 + $0xc8] sm:$0xff]  ;;  %v89_v22 = vld [vmem:[%s1941_s2 + $0x38] sm:$0xff] }
   0x8   :  { %1076 = vmatprep.subr.msk.mxu0 %vm274_vm0, %v79_v4  ;;  %1170 = vmatprep.subr.msk.mxu1 %vm274_vm0, %v79_v4  ;;  %v86_v21 = vld [vmem:[%s1941_s2 + $0x20] sm:$0xff]  ;;  %v59_v23 = vld [vmem:[%s1940_s1 + $0x48] sm:$0xff]  ;;  %v88_v25 = vld [vmem:[%s1941_s2 + $0x30] sm:$0xff] }
   0x9   :  { %1136 = vmatprep.mubr.msk.f32.mxu1 %vm274_vm0, %v1431_v10  ;;  %116 = vperm.xlu0 %1204, %v82_v13   ;;  %v74_v24 = vld [vmem:[%s1940_s1 + $0xc0] sm:$0xff]  ;;  %v91_v26 = vld [vmem:[%s1941_s2 + $0x48] sm:$0xff]  ;;  %v73_v28 = vld [vmem:[%s1940_s1 + $0xb8] sm:$0xff] }
   0xa   :  { %131 = vperm.xlu1 %1205, %v85_v14   ;;  %v58_v27 = vld [vmem:[%s1940_s1 + $0x40] sm:$0xff]  ;;  %v93_v30 = vld [vmem:[%s1941_s2 + $0x58] sm:$0xff]  ;;  %v72_v32 = vld [vmem:[%s1940_s1 + $0xb0] sm:$0xff] }
   0xb   :  { %1077 = vmatpush3.xpose.msk.msra.mxu0 %vm274_vm0, %v63_v6  ;;  %1186 = vmatpush3.xpose.msk.msra.mxu1 %vm274_vm0, %v63_v6  ;;  %v90_v29 = vld [vmem:[%s1941_s2 + $0x40] sm:$0xff]  ;;  %v57_v31 = vld [vmem:[%s1940_s1 + $0x38] sm:$0xff] }
   0xc   :  { %1078 = vmatprep.subr.msk.mxu0 %vm274_vm0, %v78_v7  ;;  %1171 = vmatprep.subr.msk.mxu1 %vm274_vm0, %v78_v7 }
   0xd   :  { %121 = vperm.xlu0 %1204, %v83_v17  }
   0xe   :  { %141 = vperm.xlu1 %1205, %v87_v18  }
   0xf   :  { %1079 = vmatpush3.xpose.msk.msra.mxu0 %vm274_vm0, %v62_v9  ;;  %1187 = vmatpush3.xpose.msk.msra.mxu1 %vm274_vm0, %v62_v9 }
  0x10   :  { %1080 = vmatprep.subr.msk.mxu0 %vm274_vm0, %v77_v11  ;;  %1172 = vmatprep.subr.msk.mxu1 %vm274_vm0, %v77_v11 }
  0x11   :  { %136 = vperm.xlu0 %1204, %v86_v21  }
  0x12   :  { %151 = vperm.xlu1 %1205, %v89_v22  }
  0x13   :  { %1081 = vmatpush3.xpose.msk.msra.mxu0 %vm274_vm0, %v61_v15  ;;  %1188 = vmatpush3.xpose.msk.msra.mxu1 %vm274_vm0, %v61_v15 }
  0x14   :  { %1082 = vmatprep.subr.msk.mxu0 %vm274_vm0, %v76_v16  ;;  %1173 = vmatprep.subr.msk.mxu1 %vm274_vm0, %v76_v16 }
  0x15   :  { %146 = vperm.xlu0 %1204, %v88_v25  }
  0x16   :  { %161 = vperm.xlu1 %1205, %v91_v26  }
  0x17   :  { %1083 = vmatpush3.xpose.msk.msra.mxu0 %vm274_vm0, %v60_v19  ;;  %1189 = vmatpush3.xpose.msk.msra.mxu1 %vm274_vm0, %v60_v19 }
  0x18   :  { %1084 = vmatprep.subr.msk.mxu0 %vm274_vm0, %v75_v20  ;;  %1174 = vmatprep.subr.msk.mxu1 %vm274_vm0, %v75_v20 }
  0x19   :  { %156 = vperm.xlu0 %1204, %v90_v29  }
  0x1b   :  { %1085 = vmatpush3.xpose.msk.msra.mxu0 %vm274_vm0, %v59_v23  ;;  %1190 = vmatpush3.xpose.msk.msra.mxu1 %vm274_vm0, %v59_v23 }
  0x1c   :  { %1086 = vmatprep.subr.msk.mxu0 %vm274_vm0, %v74_v24  ;;  %1175 = vmatprep.subr.msk.mxu1 %vm274_vm0, %v74_v24 }
  0x1f   :  { %1087 = vmatpush3.xpose.msk.msra.mxu0 %vm274_vm0, %v58_v27  ;;  %1191 = vmatpush3.xpose.msk.msra.mxu1 %vm274_vm0, %v58_v27 }
  0x20   :  { %1088 = vmatprep.subr.msk.mxu0 %vm274_vm0, %v73_v28  ;;  %1176 = vmatprep.subr.msk.mxu1 %vm274_vm0, %v73_v28 }
  0x21   :  { %9 = vsyncpa [#allocation3], 0  ;;  %171 = vperm.xlu1 %1205, %v93_v30   ;;  %v92_v33 = vld [vmem:[%s1941_s2 + $0x50] sm:$0xff]  ;;  %v95_v34 = vld [vmem:[%s1941_s2 + $0x68] sm:$0xff] }
  0x22   :  { %v56_v35 = vld [vmem:[%s1940_s1 + $0x30] sm:$0xff]  ;;  %v71_v36 = vld [vmem:[%s1940_s1 + $0xa8] sm:$0xff]  ;;  %166 = vperm.xlu0 %1204, %v92_v33   ;;  %v94_v37 = vld [vmem:[%s1941_s2 + $0x60] sm:$0xff] }
  0x23   :  { %1089 = vmatpush3.xpose.msk.msra.mxu0 %vm274_vm0, %v57_v31  ;;  %1192 = vmatpush3.xpose.msk.msra.mxu1 %vm274_vm0, %v57_v31  ;;  %v97_v38 = vld [vmem:[%s1941_s2 + $0x78] sm:$0xff]  ;;  %v55_v39 = vld [vmem:[%s1940_s1 + $0x28] sm:$0xff]  ;;  %v70_v40 = vld [vmem:[%s1940_s1 + $0xa0] sm:$0xff] }
  0x24   :  { %1090 = vmatprep.subr.msk.mxu0 %vm274_vm0, %v72_v32  ;;  %1177 = vmatprep.subr.msk.mxu1 %vm274_vm0, %v72_v32  ;;  %v96_v41 = vld [vmem:[%s1941_s2 + $0x70] sm:$0xff]  ;;  %v99_v42 = vld [vmem:[%s1941_s2 + $0x88] sm:$0xff]  ;;  %v54_v43 = vld [vmem:[%s1940_s1 + $0x20] sm:$0xff] }
  0x25   :  { %181 = vperm.xlu1 %1205, %v95_v34   ;;  %v69_v44 = vld [vmem:[%s1940_s1 + $0x98] sm:$0xff]  ;;  %v98_v45 = vld [vmem:[%s1941_s2 + $0x80] sm:$0xff]  ;;  %v68_v48 = vld [vmem:[%s1940_s1 + $0x90] sm:$0xff] }
  0x26   :  { %176 = vperm.xlu0 %1204, %v94_v37   ;;  %v101_v46 = vld [vmem:[%s1941_s2 + $0x98] sm:$0xff]  ;;  %v100_v49 = vld [vmem:[%s1941_s2 + $0x90] sm:$0xff]  ;;  %v103_v50 = vld [vmem:[%s1941_s2 + $0xa8] sm:$0xff] }
  0x27   :  { %1091 = vmatpush3.xpose.msk.msra.mxu0 %vm274_vm0, %v56_v35  ;;  %1193 = vmatpush3.xpose.msk.msra.mxu1 %vm274_vm0, %v56_v35  ;;  %v53_v47 = vld [vmem:[%s1940_s1 + $0x18] sm:$0xff]  ;;  %v52_v51 = vld [vmem:[%s1940_s1 + $0x10] sm:$0xff]  ;;  %v67_v52 = vld [vmem:[%s1940_s1 + $0x88] sm:$0xff] }
  0x28   :  { %1092 = vmatprep.subr.msk.mxu0 %vm274_vm0, %v71_v36  ;;  %1178 = vmatprep.subr.msk.mxu1 %vm274_vm0, %v71_v36  ;;  %v102_v53 = vld [vmem:[%s1941_s2 + $0xa0] sm:$0xff]  ;;  %v105_v54 = vld [vmem:[%s1941_s2 + $0xb8] sm:$0xff]  ;;  %v51_v55 = vld [vmem:[%s1940_s1 + $0x8] sm:$0xff] }
  0x29   :  { %191 = vperm.xlu1 %1205, %v97_v38   ;;  %v66_v56 = vld [vmem:[%s1940_s1 + $0x80] sm:$0xff]  ;;  %v104_v57 = vld [vmem:[%s1941_s2 + $0xb0] sm:$0xff]  ;;  %v107_v58 = vld [vmem:[%s1941_s2 + $0xc8] sm:$0xff] }
  0x2a   :  { %186 = vperm.xlu0 %1204, %v96_v41   ;;  %v50_v59 = vld [vmem:[%s1940_s1] sm:$0xff]  ;;  %v19_v61 = vld [vmem:[%s1939_s0 + $0x8] sm:$0xff]  ;;  %v109_v63 = vld [vmem:[%s1941_s2 + $0xd8] sm:$0xff] }
  0x2b   :  { %1093 = vmatpush3.xpose.msk.msra.mxu0 %vm274_vm0, %v55_v39  ;;  %1194 = vmatpush3.xpose.msk.msra.mxu1 %vm274_vm0, %v55_v39  ;;  %v106_v60 = vld [vmem:[%s1941_s2 + $0xc0] sm:$0xff]  ;;  %v35_v62 = vld [vmem:[%s1939_s0 + $0x88] sm:$0xff]  ;;  %v108_v0 = vld [vmem:[%s1941_s2 + $0xd0] sm:$0xff] }
  0x2c   :  { %1094 = vmatprep.subr.msk.mxu0 %vm274_vm0, %v70_v40  ;;  %1179 = vmatprep.subr.msk.mxu1 %vm274_vm0, %v70_v40  ;;  %v20_v1 = vld [vmem:[%s1939_s0 + $0x10] sm:$0xff]  ;;  %v111_v3 = vld [vmem:[%s1941_s2 + $0xe8] sm:$0xff]  ;;  %v110_v4 = vld [vmem:[%s1941_s2 + $0xe0] sm:$0xff] }
  0x2d   :  { %201 = vperm.xlu1 %1205, %v99_v42   ;;  %v36_v2 = vld [vmem:[%s1939_s0 + $0x90] sm:$0xff]  ;;  %v21_v5 = vld [vmem:[%s1939_s0 + $0x18] sm:$0xff]  ;;  %v22_v9 = vld [vmem:[%s1939_s0 + $0x20] sm:$0xff] }
  0x2e   :  { %196 = vperm.xlu0 %1204, %v98_v45   ;;  %v37_v6 = vld [vmem:[%s1939_s0 + $0x98] sm:$0xff]  ;;  %v23_v11 = vld [vmem:[%s1939_s0 + $0x28] sm:$0xff]  ;;  %v24_v13 = vld [vmem:[%s1939_s0 + $0x30] sm:$0xff] }
  0x2f   :  { %1095 = vmatpush3.xpose.msk.msra.mxu0 %vm274_vm0, %v54_v43  ;;  %1195 = vmatpush3.xpose.msk.msra.mxu1 %vm274_vm0, %v54_v43  ;;  %v113_v7 = vld [vmem:[%s1941_s2 + $0xf8] sm:$0xff]  ;;  %v39_v12 = vld [vmem:[%s1939_s0 + $0xa8] sm:$0xff]  ;;  %v40_v14 = vld [vmem:[%s1939_s0 + $0xb0] sm:$0xff] }
  0x30   :  { %1096 = vmatprep.subr.msk.mxu0 %vm274_vm0, %v69_v44  ;;  %1180 = vmatprep.subr.msk.mxu1 %vm274_vm0, %v69_v44  ;;  %v25_v15 = vld [vmem:[%s1939_s0 + $0x38] sm:$0xff]  ;;  %v26_v17 = vld [vmem:[%s1939_s0 + $0x40] sm:$0xff]  ;;  %v27_v19 = vld [vmem:[%s1939_s0 + $0x48] sm:$0xff] }
  0x31   :  { %211 = vperm.xlu1 %1205, %v101_v46   ;;  %v41_v16 = vld [vmem:[%s1939_s0 + $0xb8] sm:$0xff]  ;;  %v42_v18 = vld [vmem:[%s1939_s0 + $0xc0] sm:$0xff]  ;;  %v43_v20 = vld [vmem:[%s1939_s0 + $0xc8] sm:$0xff]  ;;  %v726_v46 = vlaneseq }
  0x32   :  { %206 = vperm.xlu0 %1204, %v100_v49   ;;  %v28_v21 = vld [vmem:[%s1939_s0 + $0x50] sm:$0xff]  ;;  %v29_v23 = vld [vmem:[%s1939_s0 + $0x58] sm:$0xff]  ;;  %v30_v25 = vld [vmem:[%s1939_s0 + $0x60] sm:$0xff] }
  0x33   :  { %1097 = vmatpush3.xpose.msk.msra.mxu0 %vm274_vm0, %v53_v47  ;;  %1196 = vmatpush3.xpose.msk.msra.mxu1 %vm274_vm0, %v53_v47  ;;  %v44_v22 = vld [vmem:[%s1939_s0 + $0xd0] sm:$0xff]  ;;  %v45_v24 = vld [vmem:[%s1939_s0 + $0xd8] sm:$0xff]  ;;  %v46_v26 = vld [vmem:[%s1939_s0 + $0xe0] sm:$0xff]  ;;  %v727_v47 = vshrl.u32 %v726_v46, 7 }
  0x34   :  { %1098 = vmatprep.subr.msk.mxu0 %vm274_vm0, %v68_v48  ;;  %1181 = vmatprep.subr.msk.mxu1 %vm274_vm0, %v68_v48  ;;  %v31_v27 = vld [vmem:[%s1939_s0 + $0x68] sm:$0xff]  ;;  %v32_v29 = vld [vmem:[%s1939_s0 + $0x70] sm:$0xff]  ;;  %v33_v31 = vld [vmem:[%s1939_s0 + $0x78] sm:$0xff] }
  0x35   :  { %221 = vperm.xlu1 %1205, %v103_v50   ;;  %v47_v28 = vld [vmem:[%s1939_s0 + $0xe8] sm:$0xff]  ;;  %v48_v30 = vld [vmem:[%s1939_s0 + $0xf0] sm:$0xff]  ;;  %v49_v32 = vld [vmem:[%s1939_s0 + $0xf8] sm:$0xff]  ;;  %v728_v50 = vsub.s32 0, %v727_v47 }
  0x36   :  { %216 = vperm.xlu0 %1204, %v102_v53  }
  0x37   :  { %1099 = vmatpush3.xpose.msk.msra.mxu0 %vm274_vm0, %v52_v51  ;;  %1197 = vmatpush3.xpose.msk.msra.mxu1 %vm274_vm0, %v52_v51  ;;  %v724_v51 = vld [vmem:[%s1942_s3] sm:$0x3]  ;;  %s1357_s3 = smov [#allocation2]  }
  0x38   :  { %1100 = vmatprep.subr.msk.mxu0 %vm274_vm0, %v67_v52  ;;  %1182 = vmatprep.subr.msk.mxu1 %vm274_vm0, %v67_v52  ;;  %v732_v52 = vsub.s32 1, %v727_v47  ;;  %s997_s21 = sshll.u32 %s1357_s3, 4  ;;  %s998_s21 = int_to_ptr.vmem [resolvable:$true] %s997_s21 }
  0x39   :  { %231 = vperm.xlu1 %1205, %v105_v54   ;;  %s1334_s22 = scalar_lea.vmem %s998_s21, 8192  ;;  %p1339_p1 = scmp.lt.s32.totalorder %s998_s21, %s998_s21 }
  0x3a   :  { %226 = vperm.xlu0 %1204, %v104_v57   ;;  %p1335_p0 = scmp.ne.s32.totalorder %s998_s21, %s1334_s22  ;;  %p1340_p2 = scmp.lt.s32.totalorder %s1334_s22, %s1334_s22 }
  0x3b   :  { %1101 = vmatpush3.xpose.msk.msra.mxu0 %vm274_vm0, %v51_v55  ;;  %1198 = vmatpush3.xpose.msk.msra.mxu1 %vm274_vm0, %v51_v55  ;;  %v1840_v55 = vrot.slane %v724_v51, %v728_v50 }
  0x3c   :  { %1102 = vmatprep.subr.msk.mxu0 %vm274_vm0, %v66_v56  ;;  %1183 = vmatprep.subr.msk.mxu1 %vm274_vm0, %v66_v56  ;;  %p1341_p3 = por %p1340_p2, %p1339_p1 }
  0x3d   :  { %241 = vperm.xlu1 %1205, %v107_v58  }
  0x3e   :  { %236 = vperm.xlu0 %1204, %v106_v60   ;;  %v1842_v60 = vrot.slane %v724_v51, %v732_v52  ;;  %p1342_p4 = pnand %p1341_p3, %p1335_p0 }
  0x3f   :  { %1103 = vmatpush3.xpose.msk.msra.mxu0 %vm274_vm0, %v50_v59  ;;  %1199 = vmatpush3.xpose.msk.msra.mxu1 %vm274_vm0, %v50_v59 }
  0x41   :  { %251 = vperm.xlu1 %1205, %v109_v63  }
  0x42   :  { %1105 = vmatmul.mubr.msk.f32.vlgmr.msra.gmra.mxu0 %vm274_vm0, %v1421_v8  ;;  %1137 = vmatmul.mubr.msk.f32.vlgmr.msra.gmra.mxu1 %vm274_vm0, %v1431_v10  ;;  %v112_v8 = vld [vmem:[%s1941_s2 + $0xf0] sm:$0xff]  ;;  %v38_v10 = vld [vmem:[%s1939_s0 + $0xa0] sm:$0xff] }
  0x43   :  { %1106 = vmatprep.mubr.msk.f32.mxu0 %vm274_vm0, %v19_v61  ;;  %1138 = vmatprep.mubr.msk.f32.mxu1 %vm274_vm0, %v35_v62 }
  0x44   :  { %246 = vperm.xlu0 %1204, %v108_v0  }
  0x45   :  { %261 = vperm.xlu1 %1205, %v111_v3  }
  0x46   :  { %1107 = vmatmul.mubr.msk.f32.gmra.mxu0 %vm274_vm0, %v19_v61  ;;  %1139 = vmatmul.mubr.msk.f32.gmra.mxu1 %vm274_vm0, %v35_v62 }
  0x47   :  { %1108 = vmatprep.mubr.msk.f32.mxu0 %vm274_vm0, %v20_v1  ;;  %1140 = vmatprep.mubr.msk.f32.mxu1 %vm274_vm0, %v36_v2 }
  0x48   :  { %256 = vperm.xlu0 %1204, %v110_v4  }
  0x49   :  { %271 = vperm.xlu1 %1205, %v113_v7  }
  0x4a   :  { %1109 = vmatmul.mubr.msk.f32.gmra.mxu0 %vm274_vm0, %v20_v1  ;;  %1141 = vmatmul.mubr.msk.f32.gmra.mxu1 %vm274_vm0, %v36_v2 }
  0x4b   :  { %1110 = vmatprep.mubr.msk.f32.mxu0 %vm274_vm0, %v21_v5  ;;  %1142 = vmatprep.mubr.msk.f32.mxu1 %vm274_vm0, %v37_v6 }
  0x4c   :  { %266 = vperm.xlu0 %1204, %v112_v8  }
  0x4e   :  { %1111 = vmatmul.mubr.msk.f32.gmra.mxu0 %vm274_vm0, %v21_v5  ;;  %1143 = vmatmul.mubr.msk.f32.gmra.mxu1 %vm274_vm0, %v37_v6 }
  0x4f   :  { %1112 = vmatprep.mubr.msk.f32.mxu0 %vm274_vm0, %v22_v9  ;;  %1144 = vmatprep.mubr.msk.f32.mxu1 %vm274_vm0, %v38_v10 }
  0x52   :  { %1113 = vmatmul.mubr.msk.f32.gmra.mxu0 %vm274_vm0, %v22_v9  ;;  %1145 = vmatmul.mubr.msk.f32.gmra.mxu1 %vm274_vm0, %v38_v10 }
  0x53   :  { %1114 = vmatprep.mubr.msk.f32.mxu0 %vm274_vm0, %v23_v11  ;;  %1146 = vmatprep.mubr.msk.f32.mxu1 %vm274_vm0, %v39_v12 }
  0x56   :  { %1115 = vmatmul.mubr.msk.f32.gmra.mxu0 %vm274_vm0, %v23_v11  ;;  %1147 = vmatmul.mubr.msk.f32.gmra.mxu1 %vm274_vm0, %v39_v12 }
  0x57   :  { %1116 = vmatprep.mubr.msk.f32.mxu0 %vm274_vm0, %v24_v13  ;;  %1148 = vmatprep.mubr.msk.f32.mxu1 %vm274_vm0, %v40_v14 }
  0x5a   :  { %1117 = vmatmul.mubr.msk.f32.gmra.mxu0 %vm274_vm0, %v24_v13  ;;  %1149 = vmatmul.mubr.msk.f32.gmra.mxu1 %vm274_vm0, %v40_v14 }
  0x5b   :  { %1118 = vmatprep.mubr.msk.f32.mxu0 %vm274_vm0, %v25_v15  ;;  %1150 = vmatprep.mubr.msk.f32.mxu1 %vm274_vm0, %v41_v16 }
  0x5e   :  { %1119 = vmatmul.mubr.msk.f32.gmra.mxu0 %vm274_vm0, %v25_v15  ;;  %1151 = vmatmul.mubr.msk.f32.gmra.mxu1 %vm274_vm0, %v41_v16 }
  0x5f   :  { %1120 = vmatprep.mubr.msk.f32.mxu0 %vm274_vm0, %v26_v17  ;;  %1152 = vmatprep.mubr.msk.f32.mxu1 %vm274_vm0, %v42_v18 }
  0x62   :  { %1121 = vmatmul.mubr.msk.f32.gmra.mxu0 %vm274_vm0, %v26_v17  ;;  %1153 = vmatmul.mubr.msk.f32.gmra.mxu1 %vm274_vm0, %v42_v18 }
  0x63   :  { %1122 = vmatprep.mubr.msk.f32.mxu0 %vm274_vm0, %v27_v19  ;;  %1154 = vmatprep.mubr.msk.f32.mxu1 %vm274_vm0, %v43_v20 }
  0x66   :  { %1123 = vmatmul.mubr.msk.f32.gmra.mxu0 %vm274_vm0, %v27_v19  ;;  %1155 = vmatmul.mubr.msk.f32.gmra.mxu1 %vm274_vm0, %v43_v20 }
  0x67   :  { %1124 = vmatprep.mubr.msk.f32.mxu0 %vm274_vm0, %v28_v21  ;;  %1156 = vmatprep.mubr.msk.f32.mxu1 %vm274_vm0, %v44_v22 }
  0x6a   :  { %1125 = vmatmul.mubr.msk.f32.gmra.mxu0 %vm274_vm0, %v28_v21  ;;  %1157 = vmatmul.mubr.msk.f32.gmra.mxu1 %vm274_vm0, %v44_v22 }
  0x6b   :  { %1126 = vmatprep.mubr.msk.f32.mxu0 %vm274_vm0, %v29_v23  ;;  %1158 = vmatprep.mubr.msk.f32.mxu1 %vm274_vm0, %v45_v24 }
  0x6e   :  { %1127 = vmatmul.mubr.msk.f32.gmra.mxu0 %vm274_vm0, %v29_v23  ;;  %1159 = vmatmul.mubr.msk.f32.gmra.mxu1 %vm274_vm0, %v45_v24 }
  0x6f   :  { %1128 = vmatprep.mubr.msk.f32.mxu0 %vm274_vm0, %v30_v25  ;;  %1160 = vmatprep.mubr.msk.f32.mxu1 %vm274_vm0, %v46_v26 }
  0x72   :  { %1129 = vmatmul.mubr.msk.f32.gmra.mxu0 %vm274_vm0, %v30_v25  ;;  %1161 = vmatmul.mubr.msk.f32.gmra.mxu1 %vm274_vm0, %v46_v26 }
  0x73   :  { %1130 = vmatprep.mubr.msk.f32.mxu0 %vm274_vm0, %v31_v27  ;;  %1162 = vmatprep.mubr.msk.f32.mxu1 %vm274_vm0, %v47_v28 }
  0x76   :  { %1131 = vmatmul.mubr.msk.f32.gmra.mxu0 %vm274_vm0, %v31_v27  ;;  %1163 = vmatmul.mubr.msk.f32.gmra.mxu1 %vm274_vm0, %v47_v28 }
  0x77   :  { %1132 = vmatprep.mubr.msk.f32.mxu0 %vm274_vm0, %v32_v29  ;;  %1164 = vmatprep.mubr.msk.f32.mxu1 %vm274_vm0, %v48_v30 }
  0x7a   :  { %1133 = vmatmul.mubr.msk.f32.gmra.mxu0 %vm274_vm0, %v32_v29  ;;  %1165 = vmatmul.mubr.msk.f32.gmra.mxu1 %vm274_vm0, %v48_v30 }
  0x7b   :  { %1134 = vmatprep.mubr.msk.f32.mxu0 %vm274_vm0, %v33_v31  ;;  %1166 = vmatprep.mubr.msk.f32.mxu1 %vm274_vm0, %v49_v32 }
  0x7e   :  { %1135 = vmatmul.mubr.msk.f32.gmra.mxu0 %vm274_vm0, %v33_v31  ;;  %1167 = vmatmul.mubr.msk.f32.gmra.mxu1 %vm274_vm0, %v49_v32 }
  0x80   :  { %v1809_v34 = vpop.permute.xlu1 %126 }
  0x84   :  { %v117_v33 = vpop.permute.xlu0 %116 }
  0x85   :  { %v1811_v36 = vpop.permute.xlu1 %131 }
  0x88   :  { %v122_v35 = vpop.permute.xlu0 %121 }
  0x89   :  { %v1815_v38 = vpop.permute.xlu1 %141 }
  0x8c   :  { %v1813_v37 = vpop.permute.xlu0 %136 }
  0x8d   :  { %v1819_v40 = vpop.permute.xlu1 %151 }
  0x90   :  { %v1817_v39 = vpop.permute.xlu0 %146 }
  0x91   :  { %v1823_v42 = vpop.permute.xlu1 %161 }
  0x94   :  { %v1821_v41 = vpop.permute.xlu0 %156 }
  0x9c   :  { %v1827_v44 = vpop.permute.xlu1 %171 }
  0x9d   :  { %v1825_v43 = vpop.permute.xlu0 %166 }
  0xa0   :  { %v1831_v48 = vpop.permute.xlu1 %181 }
  0xa1   :  { %v1829_v45 = vpop.permute.xlu0 %176 }
  0xa4   :  { %v1838_v53 = vpop.permute.xlu1 %191 }
  0xa5   :  { %v1833_v49 = vpop.permute.xlu0 %186 }
  0xa8   :  { %v202_v5 = vpop.permute.xlu1 %201 }
  0xa9   :  { %v197_v54 = vpop.permute.xlu0 %196 }
  0xac   :  { %v212_v52 = vpop.permute.xlu1 %211 }
  0xad   :  { %v207_v14 = vpop.permute.xlu0 %206 }
 0x102   :  { %v533_v56 = vpop.f32.mrf.mxu0  ;;  %v629_v57 = vpop.f32.mrf.mxu1 }
 0x103   :  { %v534_v58 = vadd.f32 %v533_v56, %v117_v33  ;;  %v630_v59 = vadd.f32 %v629_v57, %v197_v54 }
 0x104   :  { %v535_v61 = vpop.f32.mrf.mxu0  ;;  %v631_v62 = vpop.f32.mrf.mxu1 }
 0x105   :  { %v736_v63 = vadd.f32 %v1840_v55, %v534_v58  ;;  %v768_v0 = vadd.f32 %v1840_v55, %v630_v59  ;;  %v536_v1 = vadd.f32 %v535_v61, %v117_v33  ;;  %v632_v2 = vadd.f32 %v631_v62, %v197_v54 }
 0x106   :  { %v539_v3 = vpop.f32.mrf.mxu0  ;;  %v635_v4 = vpop.f32.mrf.mxu1 }
 0x107   :  { %v800_v6 = vmul.f32 1.442695, %v736_v63  ;;  %v864_v7 = vmul.f32 1.442695, %v768_v0  ;;  %v737_v8 = vadd.f32 %v1842_v60, %v536_v1  ;;  %v769_v9 = vadd.f32 %v1842_v60, %v632_v2 }
 0x108   :  { %v540_v10 = vadd.f32 %v539_v3, %v122_v35  ;;  %v636_v11 = vadd.f32 %v635_v4, %v202_v5  ;;  %v541_v12 = vpop.f32.mrf.mxu0  ;;  %v637_v13 = vpop.f32.mrf.mxu1 }
 0x109   :  { %1206 = vpow2.f32 %v800_v6  ;;  %v802_v15 = vmul.f32 1.442695, %v737_v8  ;;  %v866_v16 = vmul.f32 1.442695, %v769_v9  ;;  %v542_v17 = vadd.f32 %v541_v12, %v122_v35 }
 0x10a   :  { %1208 = vpow2.f32 %v864_v7  ;;  %v738_v18 = vadd.f32 %v1840_v55, %v540_v10  ;;  %v770_v19 = vadd.f32 %v1840_v55, %v636_v11  ;;  %v638_v20 = vadd.f32 %v637_v13, %v202_v5  ;;  %v545_v21 = vpop.f32.mrf.mxu0  ;;  %v641_v22 = vpop.f32.mrf.mxu1 }
 0x10b   :  { %1210 = vpow2.f32 %v802_v15  ;;  %v739_v23 = vadd.f32 %v1842_v60, %v542_v17  ;;  %v546_v24 = vadd.f32 %v545_v21, %v1809_v34  ;;  %v642_v25 = vadd.f32 %v641_v22, %v207_v14  ;;  %v217_v7 = vpop.permute.xlu0 %216  ;;  %v222_v15 = vpop.permute.xlu1 %221 }
 0x10c   :  { %1212 = vpow2.f32 %v866_v16  ;;  %v804_v26 = vmul.f32 1.442695, %v738_v18  ;;  %v868_v27 = vmul.f32 1.442695, %v770_v19  ;;  %v771_v28 = vadd.f32 %v1842_v60, %v638_v20  ;;  %v547_v29 = vpop.f32.mrf.mxu0  ;;  %v643_v30 = vpop.f32.mrf.mxu1 }
 0x10d   :  { %v806_v31 = vmul.f32 1.442695, %v739_v23  ;;  %v740_v32 = vadd.f32 %v1840_v55, %v546_v24  ;;  %v772_v33 = vadd.f32 %v1840_v55, %v642_v25  ;;  %v548_v35 = vadd.f32 %v547_v29, %v1809_v34 }
 0x10e   :  { %1214 = vpow2.f32 %v804_v26  ;;  %v870_v46 = vmul.f32 1.442695, %v771_v28  ;;  %v644_v47 = vadd.f32 %v643_v30, %v207_v14  ;;  %v551_v50 = vpop.f32.mrf.mxu0  ;;  %v647_v51 = vpop.f32.mrf.mxu1 }
 0x10f   :  { %1216 = vpow2.f32 %v868_v27  ;;  %v808_v54 = vmul.f32 1.442695, %v740_v32  ;;  %v872_v56 = vmul.f32 1.442695, %v772_v33  ;;  %v741_v57 = vadd.f32 %v1842_v60, %v548_v35 }
 0x110   :  { %1218 = vpow2.f32 %v806_v31  ;;  %v773_v58 = vadd.f32 %v1842_v60, %v644_v47  ;;  %v552_v59 = vadd.f32 %v551_v50, %v1811_v36  ;;  %v648_v61 = vadd.f32 %v647_v51, %v212_v52  ;;  %v553_v62 = vpop.f32.mrf.mxu0  ;;  %v649_v63 = vpop.f32.mrf.mxu1 }
 0x111   :  { %1220 = vpow2.f32 %v870_v46  ;;  %v810_v34 = vmul.f32 1.442695, %v741_v57  ;;  %v554_v0 = vadd.f32 %v553_v62, %v1811_v36  ;;  %v650_v1 = vadd.f32 %v649_v63, %v212_v52 }
 0x112   :  { %1222 = vpow2.f32 %v808_v54  ;;  %v874_v2 = vmul.f32 1.442695, %v773_v58  ;;  %v742_v3 = vadd.f32 %v1840_v55, %v552_v59  ;;  %v774_v4 = vadd.f32 %v1840_v55, %v648_v61  ;;  %v557_v5 = vpop.f32.mrf.mxu0  ;;  %v653_v6 = vpop.f32.mrf.mxu1 }
 0x113   :  { %1224 = vpow2.f32 %v872_v56  ;;  %v743_v8 = vadd.f32 %v1842_v60, %v554_v0  ;;  %v775_v9 = vadd.f32 %v1842_v60, %v650_v1  ;;  %v558_v10 = vadd.f32 %v557_v5, %v1813_v37  ;;  %v227_v59 = vpop.permute.xlu0 %226 }
 0x114   :  { %1226 = vpow2.f32 %v810_v34  ;;  %v812_v11 = vmul.f32 1.442695, %v742_v3  ;;  %v876_v36 = vmul.f32 1.442695, %v774_v4  ;;  %v654_v12 = vadd.f32 %v653_v6, %v217_v7  ;;  %v559_v13 = vpop.f32.mrf.mxu0  ;;  %v655_v14 = vpop.f32.mrf.mxu1 }
 0x115   :  { %1228 = vpow2.f32 %v874_v2  ;;  %v814_v16 = vmul.f32 1.442695, %v743_v8  ;;  %v878_v17 = vmul.f32 1.442695, %v775_v9  ;;  %v744_v18 = vadd.f32 %v1840_v55, %v558_v10 }
 0x116   :  { %v1207_v19 = vpop.eup %1206  ;;  %1230 = vpow2.f32 %v812_v11  ;;  %v776_v20 = vadd.f32 %v1840_v55, %v654_v12  ;;  %v560_v21 = vadd.f32 %v559_v13, %v1813_v37  ;;  %v656_v22 = vadd.f32 %v655_v14, %v217_v7  ;;  %v563_v23 = vpop.f32.mrf.mxu0 }
 0x117   :  { %v659_v24 = vpop.f32.mrf.mxu1  ;;  %v1209_v25 = vpop.eup %1208  ;;  %928 = vst [vmem:[#allocation2] sm:$0xff] %v1207_v19  ;;  %1232 = vpow2.f32 %v876_v36  ;;  %v816_v26 = vmul.f32 1.442695, %v744_v18  ;;  %v564_v27 = vadd.f32 %v563_v23, %v1815_v38 }
 0x118   :  { %v660_v28 = vadd.f32 %v659_v24, %v222_v15  ;;  %v1211_v29 = vpop.eup %1210  ;;  %960 = vst [vmem:[#allocation2 + $0x100] sm:$0xff] %v1209_v25  ;;  %1234 = vpow2.f32 %v814_v16  ;;  %v880_v30 = vmul.f32 1.442695, %v776_v20  ;;  %v745_v31 = vadd.f32 %v1842_v60, %v560_v21  ;;  %v565_v33 = vpop.f32.mrf.mxu0 }
 0x119   :  { %v777_v32 = vadd.f32 %v1842_v60, %v656_v22  ;;  %v661_v37 = vpop.f32.mrf.mxu1  ;;  %v1213_v35 = vpop.eup %1212  ;;  %929 = vst [vmem:[#allocation2 + $0x8] sm:$0xff] %v1211_v29  ;;  %1236 = vpow2.f32 %v878_v17  ;;  %v746_v46 = vadd.f32 %v1840_v55, %v564_v27  ;;  %v566_v50 = vadd.f32 %v565_v33, %v1815_v38 }
 0x11a   :  { %v778_v47 = vadd.f32 %v1840_v55, %v660_v28  ;;  %961 = vst [vmem:[#allocation2 + $0x108] sm:$0xff] %v1213_v35  ;;  %1238 = vpow2.f32 %v816_v26  ;;  %v818_v51 = vmul.f32 1.442695, %v745_v31  ;;  %v662_v54 = vadd.f32 %v661_v37, %v222_v15  ;;  %v569_v56 = vpop.f32.mrf.mxu0  ;;  %v232_v14 = vpop.permute.xlu1 %231 }
 0x11b   :  { %v882_v52 = vmul.f32 1.442695, %v777_v32  ;;  %v665_v57 = vpop.f32.mrf.mxu1  ;;  %v1215_v58 = vpop.eup %1214  ;;  %1240 = vpow2.f32 %v880_v30  ;;  %v820_v61 = vmul.f32 1.442695, %v746_v46  ;;  %v747_v63 = vadd.f32 %v1842_v60, %v566_v50 }
 0x11c   :  { %v884_v62 = vmul.f32 1.442695, %v778_v47  ;;  %v1217_v34 = vpop.eup %1216  ;;  %930 = vst [vmem:[#allocation2 + $0x10] sm:$0xff] %v1215_v58  ;;  %1242 = vpow2.f32 %v818_v51  ;;  %v779_v0 = vadd.f32 %v1842_v60, %v662_v54  ;;  %v570_v38 = vadd.f32 %v569_v56, %v1817_v39  ;;  %v571_v2 = vpop.f32.mrf.mxu0 }
 0x11d   :  { %v666_v1 = vadd.f32 %v665_v57, %v227_v59  ;;  %v667_v3 = vpop.f32.mrf.mxu1  ;;  %v1219_v4 = vpop.eup %1218  ;;  %962 = vst [vmem:[#allocation2 + $0x110] sm:$0xff] %v1217_v34  ;;  %1244 = vpow2.f32 %v882_v52  ;;  %v822_v5 = vmul.f32 1.442695, %v747_v63  ;;  %v572_v6 = vadd.f32 %v571_v2, %v1817_v39 }
 0x11e   :  { %v668_v7 = vadd.f32 %v667_v3, %v227_v59  ;;  %v1221_v8 = vpop.eup %1220  ;;  %931 = vst [vmem:[#allocation2 + $0x18] sm:$0xff] %v1219_v4  ;;  %1246 = vpow2.f32 %v820_v61  ;;  %v886_v9 = vmul.f32 1.442695, %v779_v0  ;;  %v748_v10 = vadd.f32 %v1840_v55, %v570_v38  ;;  %v575_v36 = vpop.f32.mrf.mxu0 }
 0x11f   :  { %v780_v11 = vadd.f32 %v1840_v55, %v666_v1  ;;  %v671_v12 = vpop.f32.mrf.mxu1  ;;  %v1223_v13 = vpop.eup %1222  ;;  %963 = vst [vmem:[#allocation2 + $0x118] sm:$0xff] %v1221_v8  ;;  %1248 = vpow2.f32 %v884_v62  ;;  %v749_v15 = vadd.f32 %v1842_v60, %v572_v6  ;;  %v576_v39 = vadd.f32 %v575_v36, %v1819_v40 }
 0x120   :  { %v781_v16 = vadd.f32 %v1842_v60, %v668_v7  ;;  %v1225_v17 = vpop.eup %1224  ;;  %932 = vst [vmem:[#allocation2 + $0x20] sm:$0xff] %v1223_v13  ;;  %1250 = vpow2.f32 %v822_v5  ;;  %v824_v18 = vmul.f32 1.442695, %v748_v10  ;;  %v672_v20 = vadd.f32 %v671_v12, %v232_v14  ;;  %v577_v21 = vpop.f32.mrf.mxu0 }
 0x121   :  { %v888_v19 = vmul.f32 1.442695, %v780_v11  ;;  %v673_v22 = vpop.f32.mrf.mxu1  ;;  %v1227_v23 = vpop.eup %1226  ;;  %964 = vst [vmem:[#allocation2 + $0x120] sm:$0xff] %v1225_v17  ;;  %1252 = vpow2.f32 %v886_v9  ;;  %v826_v25 = vmul.f32 1.442695, %v749_v15  ;;  %v750_v27 = vadd.f32 %v1840_v55, %v576_v39 }
 0x122   :  { %v237_v24 = vpop.permute.xlu0 %236  ;;  %v890_v26 = vmul.f32 1.442695, %v781_v16  ;;  %v1229_v28 = vpop.eup %1228  ;;  %933 = vst [vmem:[#allocation2 + $0x28] sm:$0xff] %v1227_v23  ;;  %1254 = vpow2.f32 %v824_v18  ;;  %v782_v29 = vadd.f32 %v1840_v55, %v672_v20  ;;  %v578_v30 = vadd.f32 %v577_v21, %v1819_v40 }
 0x123   :  { %v674_v31 = vadd.f32 %v673_v22, %v232_v14  ;;  %v581_v32 = vpop.f32.mrf.mxu0  ;;  %v677_v33 = vpop.f32.mrf.mxu1  ;;  %965 = vst [vmem:[#allocation2 + $0x128] sm:$0xff] %v1229_v28  ;;  %1256 = vpow2.f32 %v888_v19  ;;  %v828_v35 = vmul.f32 1.442695, %v750_v27 }
 0x124   :  { %v1231_v37 = vpop.eup %1230  ;;  %v582_v46 = vadd.f32 %v581_v32, %v1821_v41  ;;  %v678_v47 = vadd.f32 %v677_v33, %v237_v24  ;;  %1258 = vpow2.f32 %v826_v25  ;;  %v892_v51 = vmul.f32 1.442695, %v782_v29  ;;  %v242_v3 = vpop.permute.xlu1 %241 }
 0x125   :  { %v1233_v50 = vpop.eup %1232  ;;  %934 = vst [vmem:[#allocation2 + $0x30] sm:$0xff] %v1231_v37  ;;  %v751_v52 = vadd.f32 %v1842_v60, %v578_v30  ;;  %v783_v54 = vadd.f32 %v1842_v60, %v674_v31  ;;  %v583_v56 = vpop.f32.mrf.mxu0  ;;  %1260 = vpow2.f32 %v890_v26 }
 0x126   :  { %v679_v40 = vpop.f32.mrf.mxu1  ;;  %v1235_v57 = vpop.eup %1234  ;;  %966 = vst [vmem:[#allocation2 + $0x130] sm:$0xff] %v1233_v50  ;;  %v752_v58 = vadd.f32 %v1840_v55, %v582_v46  ;;  %v784_v59 = vadd.f32 %v1840_v55, %v678_v47  ;;  %v584_v61 = vadd.f32 %v583_v56, %v1821_v41  ;;  %1262 = vpow2.f32 %v828_v35 }
 0x127   :  { %v1237_v62 = vpop.eup %1236  ;;  %935 = vst [vmem:[#allocation2 + $0x38] sm:$0xff] %v1235_v57  ;;  %v830_v63 = vmul.f32 1.442695, %v751_v52  ;;  %v894_v34 = vmul.f32 1.442695, %v783_v54  ;;  %v680_v0 = vadd.f32 %v679_v40, %v237_v24  ;;  %v587_v38 = vpop.f32.mrf.mxu0  ;;  %1264 = vpow2.f32 %v892_v51 }
 0x128   :  { %v683_v1 = vpop.f32.mrf.mxu1  ;;  %v1239_v2 = vpop.eup %1238  ;;  %967 = vst [vmem:[#allocation2 + $0x138] sm:$0xff] %v1237_v62  ;;  %v832_v4 = vmul.f32 1.442695, %v752_v58  ;;  %v896_v5 = vmul.f32 1.442695, %v784_v59  ;;  %v753_v6 = vadd.f32 %v1842_v60, %v584_v61  ;;  %v588_v8 = vadd.f32 %v587_v38, %v1823_v42 }
 0x129   :  { %v1241_v7 = vpop.eup %1240  ;;  %936 = vst [vmem:[#allocation2 + $0x40] sm:$0xff] %v1239_v2  ;;  %1266 = vpow2.f32 %v830_v63  ;;  %v785_v41 = vadd.f32 %v1842_v60, %v680_v0  ;;  %v684_v9 = vadd.f32 %v683_v1, %v242_v3  ;;  %v589_v10 = vpop.f32.mrf.mxu0 }
 0x12a   :  { %v685_v11 = vpop.f32.mrf.mxu1  ;;  %v1243_v36 = vpop.eup %1242  ;;  %968 = vst [vmem:[#allocation2 + $0x140] sm:$0xff] %v1241_v7  ;;  %1268 = vpow2.f32 %v894_v34  ;;  %v834_v12 = vmul.f32 1.442695, %v753_v6  ;;  %v590_v13 = vadd.f32 %v589_v10, %v1823_v42  ;;  %v754_v39 = vadd.f32 %v1840_v55, %v588_v8 }
 0x12b   :  { %v686_v14 = vadd.f32 %v685_v11, %v242_v3  ;;  %v1245_v15 = vpop.eup %1244  ;;  %937 = vst [vmem:[#allocation2 + $0x48] sm:$0xff] %v1243_v36  ;;  %1270 = vpow2.f32 %v832_v4  ;;  %v898_v16 = vmul.f32 1.442695, %v785_v41  ;;  %v786_v17 = vadd.f32 %v1840_v55, %v684_v9  ;;  %v593_v18 = vpop.f32.mrf.mxu0 }
 0x12c   :  { %v689_v19 = vpop.f32.mrf.mxu1  ;;  %v1247_v20 = vpop.eup %1246  ;;  %969 = vst [vmem:[#allocation2 + $0x148] sm:$0xff] %v1245_v15  ;;  %1272 = vpow2.f32 %v896_v5  ;;  %v755_v22 = vadd.f32 %v1842_v60, %v590_v13  ;;  %v594_v42 = vadd.f32 %v593_v18, %v1825_v43  ;;  %v836_v25 = vmul.f32 1.442695, %v754_v39 }
 0x12d   :  { %v247_v21 = vpop.permute.xlu0 %246  ;;  %v787_v23 = vadd.f32 %v1842_v60, %v686_v14  ;;  %v1249_v24 = vpop.eup %1248  ;;  %938 = vst [vmem:[#allocation2 + $0x50] sm:$0xff] %v1247_v20  ;;  %1274 = vpow2.f32 %v834_v12  ;;  %v900_v26 = vmul.f32 1.442695, %v786_v17 }
 0x12e   :  { %v690_v27 = vadd.f32 %v689_v19, %v247_v21  ;;  %v595_v28 = vpop.f32.mrf.mxu0  ;;  %v691_v29 = vpop.f32.mrf.mxu1  ;;  %970 = vst [vmem:[#allocation2 + $0x150] sm:$0xff] %v1249_v24  ;;  %1276 = vpow2.f32 %v898_v16  ;;  %v838_v32 = vmul.f32 1.442695, %v755_v22  ;;  %v756_v37 = vadd.f32 %v1840_v55, %v594_v42 }
 0x12f   :  { %v1251_v30 = vpop.eup %1250  ;;  %v252_v31 = vpop.permute.xlu1 %251  ;;  %v902_v33 = vmul.f32 1.442695, %v787_v23  ;;  %1278 = vpow2.f32 %v836_v25  ;;  %v596_v47 = vadd.f32 %v595_v28, %v1825_v43  ;;  %v692_v50 = vadd.f32 %v691_v29, %v247_v21 }
 0x130   :  { %v1253_v35 = vpop.eup %1252  ;;  %939 = vst [vmem:[#allocation2 + $0x58] sm:$0xff] %v1251_v30  ;;  %v788_v46 = vadd.f32 %v1840_v55, %v690_v27  ;;  %v599_v51 = vpop.f32.mrf.mxu0  ;;  %1280 = vpow2.f32 %v900_v26  ;;  %v840_v56 = vmul.f32 1.442695, %v756_v37 }
 0x131   :  { %v695_v52 = vpop.f32.mrf.mxu1  ;;  %v1255_v54 = vpop.eup %1254  ;;  %971 = vst [vmem:[#allocation2 + $0x158] sm:$0xff] %v1253_v35  ;;  %v600_v40 = vadd.f32 %v599_v51, %v1827_v44  ;;  %1282 = vpow2.f32 %v838_v32  ;;  %v757_v61 = vadd.f32 %v1842_v60, %v596_v47  ;;  %v789_v62 = vadd.f32 %v1842_v60, %v692_v50 }
 0x132   :  { %v696_v57 = vadd.f32 %v695_v52, %v252_v31  ;;  %v1257_v58 = vpop.eup %1256  ;;  %940 = vst [vmem:[#allocation2 + $0x60] sm:$0xff] %v1255_v54  ;;  %v904_v59 = vmul.f32 1.442695, %v788_v46  ;;  %v601_v63 = vpop.f32.mrf.mxu0  ;;  %1284 = vpow2.f32 %v902_v33 }
 0x133   :  { %v697_v43 = vpop.f32.mrf.mxu1  ;;  %v1259_v34 = vpop.eup %1258  ;;  %972 = vst [vmem:[#allocation2 + $0x160] sm:$0xff] %v1257_v58  ;;  %v758_v0 = vadd.f32 %v1840_v55, %v600_v40  ;;  %v602_v1 = vadd.f32 %v601_v63, %v1827_v44  ;;  %1286 = vpow2.f32 %v840_v56  ;;  %v842_v3 = vmul.f32 1.442695, %v757_v61 }
 0x134   :  { %v790_v38 = vadd.f32 %v1840_v55, %v696_v57  ;;  %v1261_v2 = vpop.eup %1260  ;;  %941 = vst [vmem:[#allocation2 + $0x68] sm:$0xff] %v1259_v34  ;;  %v906_v4 = vmul.f32 1.442695, %v789_v62  ;;  %v698_v5 = vadd.f32 %v697_v43, %v252_v31  ;;  %v605_v6 = vpop.f32.mrf.mxu0  ;;  %1288 = vpow2.f32 %v904_v59 }
 0x135   :  { %v701_v7 = vpop.f32.mrf.mxu1  ;;  %v1263_v41 = vpop.eup %1262  ;;  %973 = vst [vmem:[#allocation2 + $0x168] sm:$0xff] %v1261_v2  ;;  %v844_v9 = vmul.f32 1.442695, %v758_v0  ;;  %v759_v11 = vadd.f32 %v1842_v60, %v602_v1  ;;  %1290 = vpow2.f32 %v842_v3  ;;  %v606_v12 = vadd.f32 %v605_v6, %v1829_v45 }
 0x136   :  { %v257_v8 = vpop.permute.xlu0 %256  ;;  %v908_v10 = vmul.f32 1.442695, %v790_v38  ;;  %v1265_v36 = vpop.eup %1264  ;;  %942 = vst [vmem:[#allocation2 + $0x70] sm:$0xff] %v1263_v41  ;;  %v791_v44 = vadd.f32 %v1842_v60, %v698_v5  ;;  %1292 = vpow2.f32 %v906_v4 }
 0x137   :  { %v702_v13 = vadd.f32 %v701_v7, %v257_v8  ;;  %v607_v14 = vpop.f32.mrf.mxu0  ;;  %v703_v15 = vpop.f32.mrf.mxu1  ;;  %974 = vst [vmem:[#allocation2 + $0x170] sm:$0xff] %v1265_v36  ;;  %v846_v39 = vmul.f32 1.442695, %v759_v11  ;;  %1294 = vpow2.f32 %v844_v9  ;;  %v760_v21 = vadd.f32 %v1840_v55, %v606_v12 }
 0x138   :  { %v1267_v16 = vpop.eup %1266  ;;  %v608_v17 = vadd.f32 %v607_v14, %v1829_v45  ;;  %v704_v18 = vadd.f32 %v703_v15, %v257_v8  ;;  %v910_v20 = vmul.f32 1.442695, %v791_v44  ;;  %v262_v25 = vpop.permute.xlu1 %261  ;;  %1296 = vpow2.f32 %v908_v10 }
 0x139   :  { %v1269_v19 = vpop.eup %1268  ;;  %943 = vst [vmem:[#allocation2 + $0x78] sm:$0xff] %v1267_v16  ;;  %v792_v22 = vadd.f32 %v1840_v55, %v702_v13  ;;  %v611_v23 = vpop.f32.mrf.mxu0  ;;  %1298 = vpow2.f32 %v846_v39  ;;  %v848_v29 = vmul.f32 1.442695, %v760_v21 }
 0x13a   :  { %v707_v42 = vpop.f32.mrf.mxu1  ;;  %v1271_v24 = vpop.eup %1270  ;;  %975 = vst [vmem:[#allocation2 + $0x178] sm:$0xff] %v1269_v19  ;;  %v761_v26 = vadd.f32 %v1842_v60, %v608_v17  ;;  %v793_v27 = vadd.f32 %v1842_v60, %v704_v18  ;;  %v612_v45 = vadd.f32 %v611_v23, %v1831_v48  ;;  %1300 = vpow2.f32 %v910_v20 }
 0x13b   :  { %v1273_v28 = vpop.eup %1272  ;;  %944 = vst [vmem:[#allocation2 + $0x80] sm:$0xff] %v1271_v24  ;;  %v912_v30 = vmul.f32 1.442695, %v792_v22  ;;  %v708_v31 = vadd.f32 %v707_v42, %v262_v25  ;;  %v613_v32 = vpop.f32.mrf.mxu0  ;;  %1302 = vpow2.f32 %v848_v29 }
 0x13c   :  { %v709_v33 = vpop.f32.mrf.mxu1  ;;  %v1275_v37 = vpop.eup %1274  ;;  %976 = vst [vmem:[#allocation2 + $0x180] sm:$0xff] %v1273_v28  ;;  %v850_v46 = vmul.f32 1.442695, %v761_v26  ;;  %v914_v47 = vmul.f32 1.442695, %v793_v27  ;;  %v762_v50 = vadd.f32 %v1840_v55, %v612_v45  ;;  %v614_v54 = vadd.f32 %v613_v32, %v1831_v48 }
 0x13d   :  { %v267_v35 = vpop.permute.xlu0 %266  ;;  %v1277_v51 = vpop.eup %1276  ;;  %945 = vst [vmem:[#allocation2 + $0x88] sm:$0xff] %v1275_v37  ;;  %v794_v52 = vadd.f32 %v1840_v55, %v708_v31  ;;  %v710_v56 = vadd.f32 %v709_v33, %v262_v25  ;;  %1304 = vpow2.f32 %v912_v30 }
 0x13e   :  { %v617_v40 = vpop.f32.mrf.mxu0  ;;  %v713_v57 = vpop.f32.mrf.mxu1  ;;  %977 = vst [vmem:[#allocation2 + $0x188] sm:$0xff] %v1277_v51  ;;  %v852_v59 = vmul.f32 1.442695, %v762_v50  ;;  %1306 = vpow2.f32 %v850_v46  ;;  %v763_v34 = vadd.f32 %v1842_v60, %v614_v54 }
 0x13f   :  { %v1279_v58 = vpop.eup %1278  ;;  %v618_v61 = vadd.f32 %v617_v40, %v1833_v49  ;;  %v714_v62 = vadd.f32 %v713_v57, %v267_v35  ;;  %v916_v43 = vmul.f32 1.442695, %v794_v52  ;;  %v795_v0 = vadd.f32 %v1842_v60, %v710_v56  ;;  %v272_v11 = vpop.permute.xlu1 %271 }
 0x140   :  { %v1281_v63 = vpop.eup %1280  ;;  %946 = vst [vmem:[#allocation2 + $0x90] sm:$0xff] %v1279_v58  ;;  %v619_v38 = vpop.f32.mrf.mxu0  ;;  %1308 = vpow2.f32 %v914_v47  ;;  %v854_v6 = vmul.f32 1.442695, %v763_v34 }
 0x141   :  { %v715_v48 = vpop.f32.mrf.mxu1  ;;  %v1283_v1 = vpop.eup %1282  ;;  %978 = vst [vmem:[#allocation2 + $0x190] sm:$0xff] %v1281_v63  ;;  %v764_v2 = vadd.f32 %v1840_v55, %v618_v61  ;;  %v796_v3 = vadd.f32 %v1840_v55, %v714_v62  ;;  %v620_v4 = vadd.f32 %v619_v38, %v1833_v49  ;;  %1310 = vpow2.f32 %v852_v59 }
 0x142   :  { %v1285_v5 = vpop.eup %1284  ;;  %947 = vst [vmem:[#allocation2 + $0x98] sm:$0xff] %v1283_v1  ;;  %v918_v7 = vmul.f32 1.442695, %v795_v0  ;;  %v716_v41 = vadd.f32 %v715_v48, %v267_v35  ;;  %v623_v8 = vpop.f32.mrf.mxu0  ;;  %1312 = vpow2.f32 %v916_v43 }
 0x143   :  { %v719_v9 = vpop.f32.mrf.mxu1  ;;  %v1287_v10 = vpop.eup %1286  ;;  %979 = vst [vmem:[#allocation2 + $0x198] sm:$0xff] %v1285_v5  ;;  %v856_v36 = vmul.f32 1.442695, %v764_v2  ;;  %v920_v44 = vmul.f32 1.442695, %v796_v3  ;;  %v765_v12 = vadd.f32 %v1842_v60, %v620_v4  ;;  %1314 = vpow2.f32 %v854_v6 }
 0x144   :  { %v1289_v13 = vpop.eup %1288  ;;  %948 = vst [vmem:[#allocation2 + $0xa0] sm:$0xff] %v1287_v10  ;;  %v797_v49 = vadd.f32 %v1842_v60, %v716_v41  ;;  %v624_v14 = vadd.f32 %v623_v8, %v1838_v53  ;;  %v720_v15 = vadd.f32 %v719_v9, %v272_v11  ;;  %v625_v16 = vpop.f32.mrf.mxu0  ;;  %1316 = vpow2.f32 %v918_v7 }
 0x145   :  { %v721_v39 = vpop.f32.mrf.mxu1  ;;  %v1291_v17 = vpop.eup %1290  ;;  %980 = vst [vmem:[#allocation2 + $0x1a0] sm:$0xff] %v1289_v13  ;;  %v858_v18 = vmul.f32 1.442695, %v765_v12  ;;  %v626_v19 = vadd.f32 %v625_v16, %v1838_v53  ;;  %1318 = vpow2.f32 %v856_v36 }
 0x146   :  { %v722_v20 = vadd.f32 %v721_v39, %v272_v11  ;;  %v1293_v21 = vpop.eup %1292  ;;  %949 = vst [vmem:[#allocation2 + $0xa8] sm:$0xff] %v1291_v17  ;;  %v922_v22 = vmul.f32 1.442695, %v797_v49  ;;  %v766_v23 = vadd.f32 %v1840_v55, %v624_v14  ;;  %v798_v42 = vadd.f32 %v1840_v55, %v720_v15 }
 0x147   :  { %v1295_v24 = vpop.eup %1294  ;;  %981 = vst [vmem:[#allocation2 + $0x1a8] sm:$0xff] %v1293_v21  ;;  %1320 = vpow2.f32 %v920_v44  ;;  %v767_v25 = vadd.f32 %v1842_v60, %v626_v19 }
 0x148   :  { %v799_v26 = vadd.f32 %v1842_v60, %v722_v20  ;;  %v1297_v27 = vpop.eup %1296  ;;  %950 = vst [vmem:[#allocation2 + $0xb0] sm:$0xff] %v1295_v24  ;;  %1322 = vpow2.f32 %v858_v18  ;;  %v860_v53 = vmul.f32 1.442695, %v766_v23  ;;  %v924_v45 = vmul.f32 1.442695, %v798_v42 }
 0x149   :  { %v1299_v28 = vpop.eup %1298  ;;  %982 = vst [vmem:[#allocation2 + $0x1b0] sm:$0xff] %v1297_v27  ;;  %1324 = vpow2.f32 %v922_v22  ;;  %v862_v29 = vmul.f32 1.442695, %v767_v25 }
 0x14a   :  { %v926_v30 = vmul.f32 1.442695, %v799_v26  ;;  %v1301_v31 = vpop.eup %1300  ;;  %951 = vst [vmem:[#allocation2 + $0xb8] sm:$0xff] %v1299_v28  ;;  %1326 = vpow2.f32 %v860_v53 }
 0x14b   :  { %v1303_v55 = vpop.eup %1302  ;;  %983 = vst [vmem:[#allocation2 + $0x1b8] sm:$0xff] %v1301_v31  ;;  %1328 = vpow2.f32 %v924_v45 }
 0x14c   :  { %v1305_v32 = vpop.eup %1304  ;;  %952 = vst [vmem:[#allocation2 + $0xc0] sm:$0xff] %v1303_v55  ;;  %1330 = vpow2.f32 %v862_v29 }
 0x14d   :  { %v1307_v60 = vpop.eup %1306  ;;  %984 = vst [vmem:[#allocation2 + $0x1c0] sm:$0xff] %v1305_v32  ;;  %1332 = vpow2.f32 %v926_v30 }
 0x14e   :  { %v1309_v33 = vpop.eup %1308  ;;  %953 = vst [vmem:[#allocation2 + $0xc8] sm:$0xff] %v1307_v60 }
 0x14f   :  { %v1311_v37 = vpop.eup %1310  ;;  %985 = vst [vmem:[#allocation2 + $0x1c8] sm:$0xff] %v1309_v33 }
 0x150   :  { %v1313_v35 = vpop.eup %1312  ;;  %954 = vst [vmem:[#allocation2 + $0xd0] sm:$0xff] %v1311_v37 }
 0x151   :  { %v1315_v46 = vpop.eup %1314  ;;  %986 = vst [vmem:[#allocation2 + $0x1d0] sm:$0xff] %v1313_v35 }
 0x152   :  { %v1317_v47 = vpop.eup %1316  ;;  %955 = vst [vmem:[#allocation2 + $0xd8] sm:$0xff] %v1315_v46 }
 0x153   :  { %v1319_v50 = vpop.eup %1318  ;;  %987 = vst [vmem:[#allocation2 + $0x1d8] sm:$0xff] %v1317_v47 }
 0x154   :  { %v1321_v51 = vpop.eup %1320  ;;  %956 = vst [vmem:[#allocation2 + $0xe0] sm:$0xff] %v1319_v50 }
 0x155   :  { %v1323_v52 = vpop.eup %1322  ;;  %988 = vst [vmem:[#allocation2 + $0x1e0] sm:$0xff] %v1321_v51 }
 0x156   :  { %v1325_v54 = vpop.eup %1324  ;;  %957 = vst [vmem:[#allocation2 + $0xe8] sm:$0xff] %v1323_v52 }
 0x157   :  { %v1327_v56 = vpop.eup %1326  ;;  %989 = vst [vmem:[#allocation2 + $0x1e8] sm:$0xff] %v1325_v54 }
 0x158   :  { %v1329_v40 = vpop.eup %1328  ;;  %958 = vst [vmem:[#allocation2 + $0xf0] sm:$0xff] %v1327_v56 }
 0x159   :  { %v1331_v57 = vpop.eup %1330  ;;  %990 = vst [vmem:[#allocation2 + $0x1f0] sm:$0xff] %v1329_v40 }
 0x15a   :  { %v1333_v58 = vpop.eup %1332  ;;  %959 = vst [vmem:[#allocation2 + $0xf8] sm:$0xff] %v1331_v57 }
 0x15b   :  { %991 = vst [vmem:[#allocation2 + $0x1f8] sm:$0xff] %v1333_v58 }
 0x15c   :  { %1345 = shalt.err (!%p1342_p4)
}
 0x15d   :  { %s1358_s23 = smov 256   ;;  %s1359_s24 = smov 16  }
 0x15e   :  { %1003 = dma.vmem_to_hbm [thread:$0]  %s998_s21, 8192, %s1943_s4, [#allocation3], %s1358_s23, %s1358_s23, %s1359_s24  }
 0x15f   :  { %1354 = dma.done.wait [#allocation3], 8192  }
 0x160   :  { %1355 = vsyncadd [#allocation3], 4294959104 }
 0x161   :  { %1007 = vsyncpa [#allocation3], 1 }

</bundles_post_ra>
